<compile_context>
chip_gen: v7x
topology: tpu7x:2x2x1
jax: 0.10.0
libtpu: 0.0.40
codegen_flags: <defaults>
</compile_context>

<pallas_src>
import math
import jax
import jax.numpy as jnp
from jax.experimental import pallas as pl
from jax.experimental.pallas import tpu as pltpu

VOCAB = 95           # nn.Embedding(95, hidden_channels)
VOCAB_PAD = 128      # padded to one full lane width


def _round_up(v, m):
    return (v + m - 1) // m * m


def _embedding_kernel(idx_ref, table_ref, out_ref):
    # idx_ref:   (tile_rows, pack)        int32   atom indices for this tile
    # table_ref: (128, tile_h)            float32 zero-padded embedding table
    # out_ref:   (tile_rows, pack*tile_h) float32 packed embeddings
    table = table_ref[...]
    idx = idx_ref[...]
    tile_rows, pack = idx.shape
    tile_h = table.shape[1]
    iota = jax.lax.broadcasted_iota(jnp.int32, (tile_rows, table.shape[0]), 1)
    for p in range(pack):  # pack is a small static int (1..16)
        onehot = (idx[:, p:p + 1] == iota).astype(table.dtype)   # (tile_rows, 128)
        out_ref[:, p * tile_h:(p + 1) * tile_h] = jnp.dot(
            onehot, table, preferred_element_type=jnp.float32)


def atom_embedding_no_priori(x, table, *, tile_rows=None):
    """Pallas equivalent of AtomEmbeddingNoPriori.forward.

    x:     integer array of arbitrary shape (values in [0, 95))
    table: (95, H) float32 embedding weight
    returns: float32 array of shape x.shape + (H,)
    """
    orig_shape = x.shape
    h = table.shape[1]
    idx_flat = x.reshape(-1).astype(jnp.int32)
    n = int(idx_flat.shape[0])

    # Zero-pad vocab 95 -> 128 (lane-aligned MXU K dim).
    table_pad = jnp.pad(
        table.astype(jnp.float32), ((0, VOCAB_PAD - table.shape[0]), (0, 0)))

    # Lane packing: make the output block's last dim a multiple of 128.
    pack = VOCAB_PAD // h if (h < 128 and 128 % h == 0) else 1

    # Hidden tiling for large H (keeps tile_rows large within VMEM budget).
    if h > 512 and h % 128 == 0:
        tile_h = next(c for c in (512, 384, 256, 128) if h % c == 0)
    else:
        tile_h = h
    h_tiles = h // tile_h
    out_tile_w = pack * tile_h

    # Row-tile size: as large as fits a ~12 MiB working set, capped at 2048.
    if tile_rows is None:
        budget = 12 * 1024 * 1024
        table_bytes = 2 * VOCAB_PAD * tile_h * 4          # double-buffered table
        per_row = 2 * out_tile_w * 4 + 2 * 512            # dbl-buf out + lane-padded idx
        tile_rows = max(8, (budget - table_bytes) // per_row)
        tile_rows = min(tile_rows, 2048)
    tile_rows = max(8, (int(tile_rows) // 8) * 8)         # multiple of 8

    n_rows = pl.cdiv(max(n, 1), pack)
    if n_rows <= tile_rows:
        tile_rows = int(_round_up(n_rows, 8))
        n_rows_pad = tile_rows
    else:
        n_rows_pad = int(_round_up(n_rows, tile_rows))

    n_pad = n_rows_pad * pack
    if n_pad != n:
        idx_flat = jnp.pad(idx_flat, (0, n_pad - n))      # padded rows read table[0]
    idx2d = idx_flat.reshape(n_rows_pad, pack)

    grid = (n_rows_pad // tile_rows, h_tiles)

    out = pl.pallas_call(
        _embedding_kernel,
        out_shape=jax.ShapeDtypeStruct((n_rows_pad, pack * h), jnp.float32),
        grid_spec=pltpu.PrefetchScalarGridSpec(
            num_scalar_prefetch=0,
            grid=grid,
            in_specs=[
                # (tile_rows, pack) slab of indices per row-tile
                pl.BlockSpec((tile_rows, pack), lambda i, j: (i, 0)),
                # (128, tile_h) slice of the padded embedding table
                pl.BlockSpec((VOCAB_PAD, tile_h), lambda i, j: (0, j)),
            ],
            out_specs=pl.BlockSpec((tile_rows, out_tile_w), lambda i, j: (i, j)),
        ),
        compiler_params=pltpu.CompilerParams(
            dimension_semantics=("parallel", "parallel"),
            vmem_limit_bytes=32 * 1024 * 1024,
        ),
    )(idx2d, table_pad)

    out = out.reshape(n_rows_pad * pack, h)[:n]
    return out.reshape(orig_shape + (h,))


def init_embedding_table(key, hidden_channels):
    # Matches reset_parameters(): uniform_(-sqrt(3), sqrt(3))
    bound = math.sqrt(3.0)
    return jax.random.uniform(
        key, (VOCAB, hidden_channels), dtype=jnp.float32,
        minval=-bound, maxval=bound,
    )


if __name__ == "__main__":
    key = jax.random.PRNGKey(0)
    k_table, k_idx = jax.random.split(key)

    # Small example consistent with the module: 2 structures x 8 atoms, H=32.
    hidden_channels = 32
    table = init_embedding_table(k_table, hidden_channels)
    x = jax.random.randint(k_idx, (2, 8), minval=0, maxval=VOCAB, dtype=jnp.int32)

    out = jax.block_until_ready(atom_embedding_no_priori(x, table))
    ref = table[x]
    assert out.shape == x.shape + (hidden_channels,), out.shape
    assert jnp.allclose(out, ref, atol=1e-6), "mismatch vs reference gather (packed path)"

    # Extra coverage: multi-tile grid, packed (H<128) path.
    x2 = jax.random.randint(k_idx, (1000,), minval=0, maxval=VOCAB, dtype=jnp.int32)
    out2 = jax.block_until_ready(atom_embedding_no_priori(x2, table, tile_rows=64))
    assert jnp.allclose(out2, table[x2], atol=1e-6), "mismatch (multi-tile packed path)"

    # Extra coverage: pack==1 path with lane-dense H (H multiple of 128).
    table3 = init_embedding_table(k_table, 256)
    out3 = jax.block_until_ready(atom_embedding_no_priori(x2, table3, tile_rows=64))
    assert jnp.allclose(out3, table3[x2], atol=1e-6), "mismatch (pack==1 path)"

    print("KERNEL_OK")
</pallas_src>

<mosaic_0001>
module attributes {stable_mosaic.version = 11 : i64} {
  func.func @_embedding_kernel(%arg0: i32, %arg1: i32, %arg2: memref<8x4xi32, #tpu.memory_space<vmem>>, %arg3: memref<128x32xf32, #tpu.memory_space<vmem>>, %arg4: memref<8x128xf32, #tpu.memory_space<vmem>>) attributes {dimension_semantics = [#tpu.dimension_semantics<parallel>, #tpu.dimension_semantics<parallel>], iteration_bounds = array<i64: 1, 1>, scalar_prefetch = 0 : i64, scratch_operands = 0 : i64, tpu.core_type = #tpu.core_type<tc>, window_params = [{transform_indices = @transform_0, window_bounds = array<i64: 8, 4>}, {transform_indices = @transform_1, window_bounds = array<i64: 128, 32>}, {transform_indices = @transform_2, window_bounds = array<i64: 8, 128>}]} {
    %c0 = arith.constant 0 : index
    %c0_0 = arith.constant 0 : index
    %0 = vector.load %arg3[%c0, %c0_0] : memref<128x32xf32, #tpu.memory_space<vmem>>, vector<128x32xf32>
    %c0_1 = arith.constant 0 : index
    %c0_2 = arith.constant 0 : index
    %1 = vector.load %arg2[%c0_1, %c0_2] : memref<8x4xi32, #tpu.memory_space<vmem>>, vector<8x4xi32>
    %2 = tpu.iota {dimensions = array<i32: 1>} : vector<8x128xi32>
    %3 = vector.extract_strided_slice %1 {offsets = [0, 0], sizes = [8, 1], strides = [1, 1]} : vector<8x4xi32> to vector<8x1xi32>
    %4 = vector.broadcast %3 : vector<8x1xi32> to vector<8x128xi32>
    %5 = arith.cmpi eq, %4, %2 : vector<8x128xi32>
    %6 = arith.extui %5 : vector<8x128xi1> to vector<8x128xi32>
    %7 = arith.sitofp %6 : vector<8x128xi32> to vector<8x128xf32>
    %cst = arith.constant dense<0.000000e+00> : vector<8x32xf32>
    %8 = tpu.matmul %7, %0, %cst {dimension_numbers = #tpu.dot_dimension_numbers<[1], [0], [0], [1], [0, 0, 1, 1], [], []>} : vector<8x128xf32>, vector<128x32xf32>, vector<8x32xf32> -> vector<8x32xf32>
    %c0_3 = arith.constant 0 : index
    %c0_4 = arith.constant 0 : index
    %9 = vector.load %arg4[%c0_3, %c0_4] : memref<8x128xf32, #tpu.memory_space<vmem>>, vector<8x32xf32>
    tpu.vector_store %arg4[%c0_3, %c0_4], %8 {strides = array<i32>} : memref<8x128xf32, #tpu.memory_space<vmem>>, vector<8x32xf32>,
    %10 = vector.extract_strided_slice %1 {offsets = [0, 1], sizes = [8, 1], strides = [1, 1]} : vector<8x4xi32> to vector<8x1xi32>
    %11 = vector.broadcast %10 : vector<8x1xi32> to vector<8x128xi32>
    %12 = arith.cmpi eq, %11, %2 : vector<8x128xi32>
    %13 = arith.extui %12 : vector<8x128xi1> to vector<8x128xi32>
    %14 = arith.sitofp %13 : vector<8x128xi32> to vector<8x128xf32>
    %cst_5 = arith.constant dense<0.000000e+00> : vector<8x32xf32>
    %15 = tpu.matmul %14, %0, %cst_5 {dimension_numbers = #tpu.dot_dimension_numbers<[1], [0], [0], [1], [0, 0, 1, 1], [], []>} : vector<8x128xf32>, vector<128x32xf32>, vector<8x32xf32> -> vector<8x32xf32>
    %c0_6 = arith.constant 0 : index
    %c32 = arith.constant 32 : index
    %16 = vector.load %arg4[%c0_6, %c32] : memref<8x128xf32, #tpu.memory_space<vmem>>, vector<8x32xf32>
    tpu.vector_store %arg4[%c0_6, %c32], %15 {strides = array<i32>} : memref<8x128xf32, #tpu.memory_space<vmem>>, vector<8x32xf32>,
    %17 = vector.extract_strided_slice %1 {offsets = [0, 2], sizes = [8, 1], strides = [1, 1]} : vector<8x4xi32> to vector<8x1xi32>
    %18 = vector.broadcast %17 : vector<8x1xi32> to vector<8x128xi32>
    %19 = arith.cmpi eq, %18, %2 : vector<8x128xi32>
    %20 = arith.extui %19 : vector<8x128xi1> to vector<8x128xi32>
    %21 = arith.sitofp %20 : vector<8x128xi32> to vector<8x128xf32>
    %cst_7 = arith.constant dense<0.000000e+00> : vector<8x32xf32>
    %22 = tpu.matmul %21, %0, %cst_7 {dimension_numbers = #tpu.dot_dimension_numbers<[1], [0], [0], [1], [0, 0, 1, 1], [], []>} : vector<8x128xf32>, vector<128x32xf32>, vector<8x32xf32> -> vector<8x32xf32>
    %c0_8 = arith.constant 0 : index
    %c64 = arith.constant 64 : index
    %23 = vector.load %arg4[%c0_8, %c64] : memref<8x128xf32, #tpu.memory_space<vmem>>, vector<8x32xf32>
    tpu.vector_store %arg4[%c0_8, %c64], %22 {strides = array<i32>} : memref<8x128xf32, #tpu.memory_space<vmem>>, vector<8x32xf32>,
    %24 = vector.extract_strided_slice %1 {offsets = [0, 3], sizes = [8, 1], strides = [1, 1]} : vector<8x4xi32> to vector<8x1xi32>
    %25 = vector.broadcast %24 : vector<8x1xi32> to vector<8x128xi32>
    %26 = arith.cmpi eq, %25, %2 : vector<8x128xi32>
    %27 = arith.extui %26 : vector<8x128xi1> to vector<8x128xi32>
    %28 = arith.sitofp %27 : vector<8x128xi32> to vector<8x128xf32>
    %cst_9 = arith.constant dense<0.000000e+00> : vector<8x32xf32>
    %29 = tpu.matmul %28, %0, %cst_9 {dimension_numbers = #tpu.dot_dimension_numbers<[1], [0], [0], [1], [0, 0, 1, 1], [], []>} : vector<8x128xf32>, vector<128x32xf32>, vector<8x32xf32> -> vector<8x32xf32>
    %c0_10 = arith.constant 0 : index
    %c96 = arith.constant 96 : index
    %30 = vector.load %arg4[%c0_10, %c96] : memref<8x128xf32, #tpu.memory_space<vmem>>, vector<8x32xf32>
    tpu.vector_store %arg4[%c0_10, %c96], %29 {strides = array<i32>} : memref<8x128xf32, #tpu.memory_space<vmem>>, vector<8x32xf32>,
    return
  }
  func.func @transform_0(%arg0: i32, %arg1: i32) -> (i32, i32) {
    %c0_i32 = arith.constant 0 : i32
    %c0_i32_0 = arith.constant 0 : i32
    return %arg0, %c0_i32 : i32, i32
  }
  func.func @transform_1(%arg0: i32, %arg1: i32) -> (i32, i32) {
    %c0_i32 = arith.constant 0 : i32
    %c0_i32_0 = arith.constant 0 : i32
    return %c0_i32, %arg1 : i32, i32
  }
  func.func @transform_2(%arg0: i32, %arg1: i32) -> (i32, i32) {
    %c0_i32 = arith.constant 0 : i32
    return %arg0, %arg1 : i32, i32
  }
}

</mosaic_0001>

<bundles_post_ra>
// kernel: tpu_custom_call.1
= control target key start
LH: loop header
LB: loop body
LE: loop exit
PB: predicated region body
PF: predicated region fallthrough
CT: control target
= control target key end

     0   :  { %v722_v2 = vmov 0   ;;  %v723_v3 = vmov 2   ;;  %v724_v8 = vmov 0.0|0.0   ;;  %v725_v12 = vmov 1   ;;  %s866_s0 = inlined_call_operand.vmem [shape: s32[8,4], index: 0, kind: input, shape index: {}]   ;;  %s867_s1 = inlined_call_operand.vmem [shape: f32[128,32], index: 1, kind: input, shape index: {}]   ;;  %s868_s2 = inlined_call_operand.hbm [shape: f32[8,128], index: 2, kind: output, shape index: {}]  }
   0x1   :  { %v28_v0 = vld [vmem:[%s866_s0] sm:$0xff]  ;;  %693 = vset.pattern.permute.xlu0 %v722_v2  ;;  %695 = vset.pattern.permute.xlu1 %v723_v3  ;;  %v13_v4 = vld [vmem:[%s867_s1 + $0x8] sm:$0xff]  ;;  %v14_v5 = vld [vmem:[%s867_s1 + $0x10] sm:$0xff]  ;;  %v726_v13 = vmov 3  }
   0x2   :  { %v12_v1 = vld [vmem:[%s867_s1] sm:$0xff]  ;;  %v15_v6 = vld [vmem:[%s867_s1 + $0x18] sm:$0xff]  ;;  %32 = vperm.xlu0 %693, %v28_v0   ;;  %192 = vperm.xlu1 %695, %v28_v0   ;;  %v17_v11 = vld [vmem:[%s867_s1 + $0x28] sm:$0xff] }
   0x3   :  { %v764_v7 = vpack.c.bf16 %v13_v4, %v12_v1  ;;  %585 = vmatprep.subr.bf16.mxu0 %v724_v8  ;;  %609 = vmatprep.subr.bf16.mxu1 %v724_v8  ;;  %v769_v9 = vpack.c.bf16 %v15_v6, %v14_v5  ;;  %v16_v10 = vld [vmem:[%s867_s1 + $0x20] sm:$0xff] }
   0x5   :  { %587 = vmatpush3.bf16.msra.mxu0 %v764_v7  ;;  %611 = vmatpush3.bf16.msra.mxu1 %v764_v7 }
   0x6   :  { %588 = vmatprep.subr.bf16.mxu0 %v724_v8  ;;  %612 = vmatprep.subr.bf16.mxu1 %v724_v8 }
   0x7   :  { %694 = vset.pattern.permute.xlu0 %v725_v12  ;;  %696 = vset.pattern.permute.xlu1 %v726_v13 }
   0x8   :  { %7 = vsyncpa [#allocation3], 0  ;;  %110 = vperm.xlu0 %694, %v28_v0   ;;  %274 = vperm.xlu1 %696, %v28_v0   ;;  %v781_v14 = vpack.c.bf16 %v17_v11, %v16_v10  ;;  %v18_v15 = vld [vmem:[%s867_s1 + $0x30] sm:$0xff]  ;;  %v19_v16 = vld [vmem:[%s867_s1 + $0x38] sm:$0xff]  ;;  %vm727_vm0 = vmmov 0   ;;  %v728_v17 = vmov 0.0   ;;  %v29_v31 = vlaneseq }
   0x9   :  { %590 = vmatpush3.bf16.msra.mxu0 %v769_v9  ;;  %614 = vmatpush3.bf16.msra.mxu1 %v769_v9  ;;  %v595_v18 = vpack.c.bf16 %v19_v16, %v18_v15  ;;  %v20_v19 = vld [vmem:[%s867_s1 + $0x40] sm:$0xff]  ;;  %v21_v20 = vld [vmem:[%s867_s1 + $0x48] sm:$0xff]  ;;  %v22_v22 = vld [vmem:[%s867_s1 + $0x50] sm:$0xff]  ;;  %v729_v34 = vmov 1.0   ;;  %vm107_vm5 = vcmask 261120   ;;  %s731_s14 = smov 64  }
   0xa   :  { %591 = vmatprep.subr.bf16.mxu0 %v724_v8  ;;  %615 = vmatprep.subr.bf16.mxu1 %v724_v8  ;;  %v598_v21 = vpack.c.bf16 %v21_v20, %v20_v19  ;;  %v23_v23 = vld [vmem:[%s867_s1 + $0x58] sm:$0xff]  ;;  %v24_v25 = vld [vmem:[%s867_s1 + $0x60] sm:$0xff]  ;;  %v25_v26 = vld [vmem:[%s867_s1 + $0x68] sm:$0xff]  ;;  %v30_v32 = vand.u32 127, %v29_v31  ;;  %s732_s15 = smov 96   ;;  %vm189_vm6 = vcmask 523520  }
   0xb   :  { %477 = vmatprep.mubr.msk.f32.mxu0 %vm727_vm0, %v728_v17  ;;  %512 = vmatprep.mubr.msk.f32.mxu1 %vm727_vm0, %v728_v17  ;;  %v601_v24 = vpack.c.bf16 %v23_v23, %v22_v22  ;;  %v604_v27 = vpack.c.bf16 %v25_v26, %v24_v25  ;;  %v26_v28 = vld [vmem:[%s867_s1 + $0x70] sm:$0xff]  ;;  %v27_v29 = vld [vmem:[%s867_s1 + $0x78] sm:$0xff]  ;;  %s730_s1 = smov 32   ;;  %vm271_vm7 = vcmask 785920   ;;  %s733_s16 = smov [#allocation2]   ;;  %vm353_vm8 = vcmask 1048320  }
   0xc   :  { %697 = vset.pattern.permute.xlu0 %v726_v13  ;;  %v607_v30 = vpack.c.bf16 %v27_v29, %v26_v28  ;;  %s361_s17 = sshll.u32 %s733_s16, 4  ;;  %s362_s17 = int_to_ptr.vmem [resolvable:$true] %s361_s17 }
   0xd   :  { %593 = vmatpush3.bf16.msra.mxu0 %v781_v14  ;;  %617 = vmatpush3.bf16.msra.mxu1 %v781_v14  ;;  %s698_s18 = scalar_lea.vmem %s362_s17, 128  ;;  %p703_p1 = scmp.lt.s32.totalorder %s362_s17, %s362_s17 }
   0xe   :  { %594 = vmatprep.subr.bf16.mxu0 %v724_v8  ;;  %618 = vmatprep.subr.bf16.mxu1 %v724_v8  ;;  %p699_p0 = scmp.ne.s32.totalorder %s362_s17, %s698_s18  ;;  %p704_p2 = scmp.lt.s32.totalorder %s698_s18, %s698_s18 }
  0x10   :  { %p705_p3 = por %p704_p2, %p703_p1 }
  0x11   :  { %596 = vmatpush3.bf16.msra.mxu0 %v595_v18  ;;  %620 = vmatpush3.bf16.msra.mxu1 %v595_v18 }
  0x12   :  { %597 = vmatprep.subr.bf16.mxu0 %v724_v8  ;;  %621 = vmatprep.subr.bf16.mxu1 %v724_v8  ;;  %p706_p4 = pnand %p705_p3, %p699_p0 }
  0x15   :  { %599 = vmatpush3.bf16.msra.mxu0 %v598_v21  ;;  %623 = vmatpush3.bf16.msra.mxu1 %v598_v21 }
  0x16   :  { %600 = vmatprep.subr.bf16.mxu0 %v724_v8  ;;  %624 = vmatprep.subr.bf16.mxu1 %v724_v8 }
  0x19   :  { %602 = vmatpush3.bf16.msra.mxu0 %v601_v24  ;;  %626 = vmatpush3.bf16.msra.mxu1 %v601_v24 }
  0x1a   :  { %603 = vmatprep.subr.bf16.mxu0 %v724_v8  ;;  %627 = vmatprep.subr.bf16.mxu1 %v724_v8 }
  0x1d   :  { %605 = vmatpush3.bf16.msra.mxu0 %v604_v27  ;;  %629 = vmatpush3.bf16.msra.mxu1 %v604_v27 }
  0x1e   :  { %606 = vmatprep.subr.bf16.mxu0 %v724_v8  ;;  %630 = vmatprep.subr.bf16.mxu1 %v724_v8 }
  0x21   :  { %608 = vmatpush3.bf16.msra.mxu0 %v607_v30  ;;  %632 = vmatpush3.bf16.msra.mxu1 %v607_v30 }
  0x22   :  { %633 = vmatprep.subr.bf16.mxu0 %v724_v8  ;;  %657 = vmatprep.subr.bf16.mxu1 %v724_v8 }
  0x81   :  { %v33_v33 = vpop.permute.xlu0 %32  ;;  %v193_v36 = vpop.permute.xlu1 %192 }
  0x82   :  { %vm34_vm1 = vcmp.eq.s32.totalorder %v33_v33, %v30_v32  ;;  %vm194_vm3 = vcmp.eq.s32.totalorder %v193_v36, %v30_v32 }
  0x83   :  { %478 = vmatmul.mubr.msk.f32.vlgmr.msra.gmra.mrb[0].mxu0 %vm34_vm1, %v729_v34 }
  0x84   :  { %635 = vmatpush3.bf16.msra.mxu0 %v764_v7  ;;  %547 = vmatprep.mubr.msk.f32.mxu0 %vm727_vm0, %v728_v17 }
  0x85   :  { %636 = vmatprep.subr.bf16.mxu0 %v724_v8 }
  0x87   :  { %v111_v35 = vpop.permute.xlu0 %110  ;;  %v275_v37 = vpop.permute.xlu1 %274 }
  0x88   :  { %vm112_vm2 = vcmp.eq.s32.totalorder %v111_v35, %v30_v32  ;;  %638 = vmatpush3.bf16.msra.mxu0 %v769_v9  ;;  %vm276_vm4 = vcmp.eq.s32.totalorder %v275_v37, %v30_v32 }
  0x89   :  { %513 = vmatmul.mubr.msk.f32.vlgmr.msra.gmra.mrb[0].mxu1 %vm112_vm2, %v729_v34  ;;  %639 = vmatprep.subr.bf16.mxu0 %v724_v8 }
  0x8a   :  { %659 = vmatpush3.bf16.msra.mxu1 %v764_v7  ;;  %582 = vmatprep.mubr.msk.f32.mxu1 %vm727_vm0, %v728_v17 }
  0x8b   :  { %660 = vmatprep.subr.bf16.mxu1 %v724_v8 }
  0x8c   :  { %641 = vmatpush3.bf16.msra.mxu0 %v781_v14 }
  0x8d   :  { %642 = vmatprep.subr.bf16.mxu0 %v724_v8 }
  0x8e   :  { %662 = vmatpush3.bf16.msra.mxu1 %v769_v9 }
  0x8f   :  { %663 = vmatprep.subr.bf16.mxu1 %v724_v8 }
  0x90   :  { %644 = vmatpush3.bf16.msra.mxu0 %v595_v18 }
  0x91   :  { %645 = vmatprep.subr.bf16.mxu0 %v724_v8 }
  0x92   :  { %665 = vmatpush3.bf16.msra.mxu1 %v781_v14 }
  0x93   :  { %666 = vmatprep.subr.bf16.mxu1 %v724_v8 }
  0x94   :  { %647 = vmatpush3.bf16.msra.mxu0 %v598_v21 }
  0x95   :  { %648 = vmatprep.subr.bf16.mxu0 %v724_v8 }
  0x96   :  { %668 = vmatpush3.bf16.msra.mxu1 %v595_v18 }
  0x97   :  { %669 = vmatprep.subr.bf16.mxu1 %v724_v8 }
  0x98   :  { %650 = vmatpush3.bf16.msra.mxu0 %v601_v24 }
  0x99   :  { %651 = vmatprep.subr.bf16.mxu0 %v724_v8 }
  0x9a   :  { %671 = vmatpush3.bf16.msra.mxu1 %v598_v21 }
  0x9b   :  { %672 = vmatprep.subr.bf16.mxu1 %v724_v8 }
  0x9c   :  { %653 = vmatpush3.bf16.msra.mxu0 %v604_v27 }
  0x9d   :  { %654 = vmatprep.subr.bf16.mxu0 %v724_v8 }
  0x9e   :  { %674 = vmatpush3.bf16.msra.mxu1 %v601_v24 }
  0x9f   :  { %675 = vmatprep.subr.bf16.mxu1 %v724_v8 }
  0xa0   :  { %656 = vmatpush3.bf16.msra.mxu0 %v607_v30 }
  0xa2   :  { %677 = vmatpush3.bf16.msra.mxu1 %v604_v27 }
  0xa3   :  { %678 = vmatprep.subr.bf16.mxu1 %v724_v8  ;;  %548 = vmatmul.mubr.msk.f32.vlgmr.msra.gmra.mrb[2].mxu0 %vm194_vm3, %v729_v34 }
  0xa6   :  { %680 = vmatpush3.bf16.msra.mxu1 %v607_v30 }
  0xa9   :  { %583 = vmatmul.mubr.msk.f32.vlgmr.msra.gmra.mrb[2].mxu1 %vm276_vm4, %v729_v34 }
 0x156   :  { %v103_v38 = vpop.f32.mrb[0].mxu0 }
 0x157   :  { %108 = vst.msk [vmem:[#allocation2] sm:$0xff] %vm107_vm5, %v103_v38  ;;  %v479_v39 = vpop.f32.mrb[1].mxu0 }
 0x15c   :  { %v181_v40 = vpop.f32.mrb[0].mxu1 }
 0x15d   :  { %186 = vrot.lane.b32.xlu1 %v181_v40, %s730_s1  ;;  %v514_v41 = vpop.f32.mrb[1].mxu1 }
 0x176   :  { %v263_v42 = vpop.f32.mrb[2].mxu0 }
 0x177   :  { %268 = vrot.lane.b32.xlu0 %v263_v42, %s731_s14  ;;  %v549_v43 = vpop.f32.mrb[3].mxu0 }
 0x17c   :  { %v345_v44 = vpop.f32.mrb[2].mxu1 }
 0x17d   :  { %350 = vrot.lane.b32.xlu1 %v345_v44, %s732_s15  ;;  %v584_v45 = vpop.f32.mrb[3].mxu1 }
 0x1cf   :  { %v187_v46 = vpop.permute.xlu1 %186 }
 0x1d0   :  { %190 = vst.msk [vmem:[#allocation2] sm:$0xff] %vm189_vm6, %v187_v46 }
 0x1e9   :  { %v269_v47 = vpop.permute.xlu0 %268 }
 0x1ea   :  { %272 = vst.msk [vmem:[#allocation2] sm:$0xff] %vm271_vm7, %v269_v47 }
 0x1ef   :  { %v351_v48 = vpop.permute.xlu1 %350 }
 0x1f0   :  { %354 = vst.msk [vmem:[#allocation2] sm:$0xff] %vm353_vm8, %v351_v48 }
 0x1f1   :  { %709 = shalt.err (!%p706_p4)
}
 0x1f2   :  { %s710_s20 = scalar_lea.hbm %s868_s2, 128 }
 0x1f3   :  { %p711_p5 = scmp.ne.s32.totalorder %s868_s2, %s710_s20  ;;  %p714_p6 = scmp.lt.u32.totalorder %s710_s20, %s868_s2 }
 0x1f5   :  { %p716_p7 = pnand %p714_p6, %p711_p5 }
 0x1f7   :  { %719 = shalt.err (!%p716_p7)
}
 0x1f8   :  { %364 = dma.vmem_to_hbm [thread:$0]  %s362_s17, 128, %s868_s2, [#allocation3]  }
 0x1f9   :  { %720 = dma.done.wait [#allocation3], 128  }
 0x1fa   :  { %721 = vsyncadd [#allocation3], 4294967168 }
 0x1fb   :  { %368 = vsyncpa [#allocation3], 1 }

</bundles_post_ra>
